<compile_context>
chip_gen: v7x
topology: tpu7x:2x2x1
jax: 0.10.0
libtpu: 0.0.40
codegen_flags: <defaults>
</compile_context>

<pallas_src>
import functools

import jax
import jax.numpy as jnp
from jax.experimental import pallas as pl
from jax.experimental.pallas import tpu as pltpu


def _round_up(x, m):
    return ((x + m - 1) // m) * m


def _contrastive_kernel(o1_ref, o2_ref, t_ref, out_ref, *, margin, eps):
    # Tile views: o1/o2 are (TB, D), t is (TB, 1), out is (1, 1, 128).
    o1 = o1_ref[...].astype(jnp.float32)
    o2 = o2_ref[...].astype(jnp.float32)
    t = t_ref[...].astype(jnp.float32)

    diff = o1 - o2
    d2 = jnp.sum(diff * diff, axis=-1, keepdims=True)      # (TB, 1) squared L2
    d = jnp.sqrt(d2)                                        # needed for hinge only

    hinge = jnp.maximum(margin - (d + eps), 0.0)
    losses = 0.5 * (t * d2 + (1.0 - t) * hinge * hinge)     # (TB, 1)

    # Per-tile partial sum, broadcast across the 128 lanes so the store is an
    # unmasked, lane-dense vst.  Final (tiny) reduction happens in the wrapper.
    partial = jnp.sum(losses)
    out_ref[...] = jnp.broadcast_to(partial, out_ref.shape)


def contrastive_loss(output1, output2, target, *, margin=0.5, eps=1e-9,
                     block_rows=512):
    """Mean contrastive loss. output1/output2: (B, D); target: (B,) in {0,1}."""
    B, D = output1.shape
    itemsize = jnp.dtype(output1.dtype).itemsize

    # Sublane alignment for the batch tile (f32 -> 8, bf16 -> 16, int8 -> 32).
    row_align = 8 * max(1, 4 // itemsize)
    TB = min(int(block_rows), _round_up(B, row_align))
    TB = _round_up(TB, row_align)
    Bp = _round_up(B, TB)
    G = Bp // TB

    t = target.astype(jnp.float32).reshape(B, 1)
    o1, o2 = output1, output2
    if Bp != B:
        pad = Bp - B
        o1 = jnp.pad(o1, ((0, pad), (0, 0)))
        o2 = jnp.pad(o2, ((0, pad), (0, 0)))
        # Padded rows: identical embeddings (d=0) with target=1 -> zero loss.
        t = jnp.pad(t, ((0, pad), (0, 0)), constant_values=1.0)

    kernel = functools.partial(
        _contrastive_kernel, margin=float(margin), eps=float(eps)
    )

    # Advisory cost estimate (mem-bound: ~2*B*D input bytes dominate).
    cost = pl.CostEstimate(
        flops=4 * Bp * D,
        transcendentals=Bp,
        bytes_accessed=2 * Bp * D * itemsize + Bp * 4 + G * 128 * 4,
    )

    # Pipeline footprint: 2 inputs x 2 buffers x (TB, D), plus target / output
    # buffers.  Keep the scoped limit generous but <= v7x's 64 MiB physical.
    tile_bytes = 2 * 2 * TB * D * itemsize + 2 * TB * 4 + 2 * 128 * 4
    vmem_limit = int(min(max(2 * tile_bytes, 32 * 1024 * 1024),
                         64 * 1024 * 1024))

    partials = pl.pallas_call(
        kernel,
        out_shape=jax.ShapeDtypeStruct((G, 1, 128), jnp.float32),
        grid=(G,),
        in_specs=[
            pl.BlockSpec((TB, D), lambda i: (i, 0)),
            pl.BlockSpec((TB, D), lambda i: (i, 0)),
            pl.BlockSpec((TB, 1), lambda i: (i, 0)),
        ],
        out_specs=pl.BlockSpec((1, 1, 128), lambda i: (i, 0, 0)),
        compiler_params=pltpu.CompilerParams(
            dimension_semantics=("parallel",),
            vmem_limit_bytes=vmem_limit,
        ),
        cost_estimate=cost,
    )(o1, o2, t)

    # Tiny cross-tile reduction in plain JAX; divide by the *original* batch.
    return jnp.sum(partials[:, 0, 0]) / jnp.float32(B)


def _reference(output1, output2, target, margin=0.5, eps=1e-9):
    o1 = output1.astype(jnp.float32)
    o2 = output2.astype(jnp.float32)
    d = jnp.sqrt(jnp.sum((o1 - o2) ** 2, axis=-1))
    t = target.astype(jnp.float32)
    losses = 0.5 * (
        t * d**2 + (1.0 - t) * jnp.maximum(margin - (d + eps), 0.0) ** 2
    )
    return losses.mean()


if __name__ == "__main__":
    key = jax.random.PRNGKey(0)
    k1, k2, k3, k4, k5, k6 = jax.random.split(key, 6)

    # --- Test 1: small single-tile case -------------------------------------
    B, D = 8, 32
    o1 = jax.random.normal(k1, (B, D), dtype=jnp.float32)
    o2 = jax.random.normal(k2, (B, D), dtype=jnp.float32)
    tgt = jax.random.bernoulli(k3, 0.5, (B,)).astype(jnp.int32)

    loss = contrastive_loss(o1, o2, tgt, margin=0.5)
    jax.block_until_ready(loss)
    ref = _reference(o1, o2, tgt, margin=0.5)
    assert jnp.allclose(loss, ref, atol=1e-5, rtol=1e-5), (loss, ref)

    # --- Test 2: multi-tile, ragged batch (exercises padding + parallel grid)
    B2, D2 = 20, 32
    o1b = jax.random.normal(k4, (B2, D2), dtype=jnp.float32)
    o2b = jax.random.normal(k5, (B2, D2), dtype=jnp.float32)
    tb = jax.random.bernoulli(k6, 0.5, (B2,)).astype(jnp.int32)

    loss2 = contrastive_loss(o1b, o2b, tb, margin=0.5, block_rows=8)
    jax.block_until_ready(loss2)
    ref2 = _reference(o1b, o2b, tb, margin=0.5)
    assert jnp.allclose(loss2, ref2, atol=1e-5, rtol=1e-5), (loss2, ref2)

    # --- Test 3: bf16 inputs (halved DMA bytes), f32 math inside the kernel --
    o1h = o1b.astype(jnp.bfloat16)
    o2h = o2b.astype(jnp.bfloat16)
    loss3 = contrastive_loss(o1h, o2h, tb, margin=0.5, block_rows=8)
    jax.block_until_ready(loss3)
    ref3 = _reference(o1h, o2h, tb, margin=0.5)  # reference also upcasts bf16->f32
    assert jnp.allclose(loss3, ref3, atol=1e-5, rtol=1e-5), (loss3, ref3)

    print("KERNEL_OK")
</pallas_src>

<mosaic_0001>
module attributes {stable_mosaic.version = 11 : i64} {
  func.func @_contrastive_kernel(%arg0: i32, %arg1: memref<8x32xf32, #tpu.memory_space<vmem>>, %arg2: memref<8x32xf32, #tpu.memory_space<vmem>>, %arg3: memref<8x1xf32, #tpu.memory_space<vmem>>, %arg4: memref<1x1x128xf32, #tpu.memory_space<vmem>>) attributes {dimension_semantics = [#tpu.dimension_semantics<parallel>], iteration_bounds = array<i64: 1>, scalar_prefetch = 0 : i64, scratch_operands = 0 : i64, tpu.core_type = #tpu.core_type<tc>, window_params = [{transform_indices = @transform_0, window_bounds = array<i64: 8, 32>}, {transform_indices = @transform_1, window_bounds = array<i64: 8, 32>}, {transform_indices = @transform_2, window_bounds = array<i64: 8, 1>}, {transform_indices = @transform_3, window_bounds = array<i64: 1, 1, 128>}]} {
    %c0 = arith.constant 0 : index
    %c0_0 = arith.constant 0 : index
    %0 = vector.load %arg1[%c0, %c0_0] : memref<8x32xf32, #tpu.memory_space<vmem>>, vector<8x32xf32>
    %c0_1 = arith.constant 0 : index
    %c0_2 = arith.constant 0 : index
    %1 = vector.load %arg2[%c0_1, %c0_2] : memref<8x32xf32, #tpu.memory_space<vmem>>, vector<8x32xf32>
    %c0_3 = arith.constant 0 : index
    %c0_4 = arith.constant 0 : index
    %2 = vector.load %arg3[%c0_3, %c0_4] : memref<8x1xf32, #tpu.memory_space<vmem>>, vector<8x1xf32>
    %3 = arith.subf %0, %1 : vector<8x32xf32>
    %4 = arith.mulf %3, %3 : vector<8x32xf32>
    %cst = arith.constant dense<0.000000e+00> : vector<8xf32>
    %5 = vector.multi_reduction <add>, %4, %cst [1] : vector<8x32xf32> to vector<8xf32>
    %6 = vector.shape_cast %5 : vector<8xf32> to vector<8x1xf32>
    %7 = math.sqrt %6 : vector<8x1xf32>
    %cst_5 = arith.constant 9.99999971E-10 : f32
    %8 = vector.broadcast %cst_5 : f32 to vector<8x1xf32>
    %9 = arith.addf %7, %8 : vector<8x1xf32>
    %cst_6 = arith.constant 5.000000e-01 : f32
    %10 = vector.broadcast %cst_6 : f32 to vector<8x1xf32>
    %11 = arith.subf %10, %9 : vector<8x1xf32>
    %cst_7 = arith.constant 0.000000e+00 : f32
    %12 = vector.broadcast %cst_7 : f32 to vector<8x1xf32>
    %13 = arith.maximumf %11, %12 : vector<8x1xf32>
    %14 = arith.mulf %2, %6 : vector<8x1xf32>
    %cst_8 = arith.constant 1.000000e+00 : f32
    %15 = vector.broadcast %cst_8 : f32 to vector<8x1xf32>
    %16 = arith.subf %15, %2 : vector<8x1xf32>
    %17 = arith.mulf %16, %13 : vector<8x1xf32>
    %18 = arith.mulf %17, %13 : vector<8x1xf32>
    %19 = arith.addf %14, %18 : vector<8x1xf32>
    %cst_9 = arith.constant 5.000000e-01 : f32
    %20 = vector.broadcast %cst_9 : f32 to vector<8x1xf32>
    %21 = arith.mulf %20, %19 : vector<8x1xf32>
    %22 = vector.shape_cast %21 : vector<8x1xf32> to vector<1x8x1xf32>
    %cst_10 = arith.constant dense<0.000000e+00> : vector<1xf32>
    %23 = vector.multi_reduction <add>, %22, %cst_10 [1, 2] : vector<1x8x1xf32> to vector<1xf32>
    %24 = vector.shape_cast %23 : vector<1xf32> to vector<1x1x1xf32>
    %25 = vector.extract %24[0, 0, 0] : f32 from vector<1x1x1xf32>
    %26 = vector.broadcast %25 : f32 to vector<1x1x128xf32>
    %c0_11 = arith.constant 0 : index
    %c0_12 = arith.constant 0 : index
    %c0_13 = arith.constant 0 : index
    %27 = vector.load %arg4[%c0_11, %c0_12, %c0_13] : memref<1x1x128xf32, #tpu.memory_space<vmem>>, vector<1x1x128xf32>
    tpu.vector_store %arg4[%c0_11, %c0_12, %c0_13], %26 {strides = array<i32>} : memref<1x1x128xf32, #tpu.memory_space<vmem>>, vector<1x1x128xf32>,
    return
  }
  func.func @transform_0(%arg0: i32) -> (i32, i32) {
    %c0_i32 = arith.constant 0 : i32
    %c0_i32_0 = arith.constant 0 : i32
    return %arg0, %c0_i32 : i32, i32
  }
  func.func @transform_1(%arg0: i32) -> (i32, i32) {
    %c0_i32 = arith.constant 0 : i32
    %c0_i32_0 = arith.constant 0 : i32
    return %arg0, %c0_i32 : i32, i32
  }
  func.func @transform_2(%arg0: i32) -> (i32, i32) {
    %c0_i32 = arith.constant 0 : i32
    %c0_i32_0 = arith.constant 0 : i32
    return %arg0, %c0_i32 : i32, i32
  }
  func.func @transform_3(%arg0: i32) -> (i32, i32, i32) {
    %c0_i32 = arith.constant 0 : i32
    %c0_i32_0 = arith.constant 0 : i32
    %c0_i32_1 = arith.constant 0 : i32
    return %arg0, %c0_i32, %c0_i32_0 : i32, i32, i32
  }
}

</mosaic_0001>

<bundles_post_ra>
// kernel: tpu_custom_call.1
= control target key start
LH: loop header
LB: loop body
LE: loop exit
PB: predicated region body
PF: predicated region fallthrough
CT: control target
= control target key end

     0   :  { %8 = vsyncpa [#allocation3], 0  ;;  %s186_s0 = inlined_call_operand.vmem [shape: f32[8,32], index: 0, kind: input, shape index: {}]   ;;  %s187_s1 = inlined_call_operand.hbm [shape: f32[8,32], index: 1, kind: input, shape index: {}]   ;;  %s188_s2 = inlined_call_operand.vmem [shape: f32[8,1], index: 2, kind: input, shape index: {}]   ;;  %s189_s3 = inlined_call_operand.hbm [shape: f32[1,1,128], index: 3, kind: output, shape index: {}]  }
   0x1   :  { %9 = vsyncpa [#allocation4], 0  ;;  %s134_s12 = smov [#allocation2]   ;;  %s86_s16 = scalar_lea.hbm %s187_s1, 128 }
   0x2   :  { %s18_s13 = sshll.u32 %s134_s12, 4  ;;  %p87_p0 = scmp.ne.s32.totalorder %s187_s1, %s86_s16  ;;  %s19_s13 = int_to_ptr.vmem [resolvable:$true] %s18_s13 }
   0x3   :  { %p90_p1 = scmp.lt.u32.totalorder %s86_s16, %s187_s1 }
   0x5   :  { %p92_p2 = pnand %p90_p1, %p87_p0 }
   0x7   :  { %95 = shalt.err (!%p92_p2)
}
   0x8   :  { %s96_s21 = scalar_lea.vmem %s19_s13, 128  ;;  %p101_p4 = scmp.lt.s32.totalorder %s19_s13, %s19_s13 }
   0x9   :  { %p97_p3 = scmp.ne.s32.totalorder %s19_s13, %s96_s21  ;;  %p102_p5 = scmp.lt.s32.totalorder %s96_s21, %s96_s21 }
   0xb   :  { %p103_p6 = por %p102_p5, %p101_p4 }
   0xd   :  { %p104_p7 = pnand %p103_p6, %p97_p3 }
   0xf   :  { %107 = shalt.err (!%p104_p7)
}
  0x10   :  { %21 = dma.hbm_to_vmem [thread:$0]  %s187_s1, 128, %s19_s13, [#allocation3]  }
  0x11   :  { %130 = dma.done.wait [#allocation3], 128  }
  0x12   :  { %131 = vsyncadd [#allocation3], 4294967168  ;;  %v27_v0 = vld [vmem:[%s186_s0] sm:$0xff]  ;;  %vm32_vm0 = vcmask 261120   ;;  %vm52_vm3 = vcmask 7168   ;;  %s135_s0 = smov [#allocation5]  }
  0x13   :  { %v28_v1 = vld [vmem:[#allocation2] sm:$0xff] }
  0x14   :  { %v30_v2 = vsub.f32 %v27_v0, %v28_v1  ;;  %v29_v12 = vld [vmem:[%s188_s2] sm:$0xff]  ;;  %s71_s2 = sshll.u32 %s135_s0, 4  ;;  %s72_s2 = int_to_ptr.vmem [resolvable:$true] %s71_s2 }
  0x15   :  { %v47_v14 = vsub.f32 1.0, %v29_v12  ;;  %s108_s28 = scalar_lea.vmem %s72_s2, 16  ;;  %s112_s29 = scalar_lea.vmem %s72_s2, 32 }
  0x16   :  { %v31_v3 = vmul.f32 %v30_v2, %v30_v2  ;;  %p109_p8 = scmp.ne.s32.totalorder %s72_s2, %s108_s28  ;;  %p113_p9 = scmp.lt.s32.totalorder %s72_s2, %s72_s2 }
  0x17   :  { %p114_p10 = scmp.lt.s32.totalorder %s112_s29, %s108_s28 }
  0x18   :  { %v33_v4 = vsel %vm32_vm0, %v31_v3, 0.0 }
  0x19   :  { %34 = vadd.xlane.f32.xlu0 %v33_v4  ;;  %p115_p11 = por %p114_p10, %p113_p9 }
  0x1b   :  { %p116_p12 = pnand %p115_p11, %p109_p8 }
  0xa6   :  { %v35_v5 = vpop.xlane.xlu0 %34 }
  0xa7   :  { %84 = vrsqrt.f32 %v35_v5  ;;  %vm38_vm1 = vcmp.eq.f32.partialorder %v35_v5, inf  ;;  %v41_v8 = vand.u32 2147483648, %v35_v5  ;;  %vm40_vm2 = vcmp.eq.f32.partialorder %v35_v5, 0.0 }
  0xa8   :  { %v46_v17 = vmul.f32 %v35_v5, %v29_v12 }
  0xb1   :  { %v85_v6 = vpop.eup %84 }
  0xb2   :  { %v37_v7 = vmul.f32 %v85_v6, %v35_v5 }
  0xb4   :  { %v39_v9 = vsel %vm38_vm1, %v35_v5, %v37_v7 }
  0xb5   :  { %v42_v10 = vsel %vm40_vm2, %v41_v8, %v39_v9 }
  0xb6   :  { %v43_v11 = vadd.f32 1e-09, %v42_v10 }
  0xb8   :  { %v44_v13 = vsub.f32 0.5, %v43_v11 }
  0xba   :  { %v45_v15 = vmax.f32 %v44_v13, 0.0 }
  0xbc   :  { %v48_v16 = vmul.f32 %v47_v14, %v45_v15 }
  0xbe   :  { %v49_v18 = vmul.f32 %v48_v16, %v45_v15 }
  0xc0   :  { %v50_v19 = vadd.f32 %v49_v18, %v46_v17 }
  0xc2   :  { %v51_v20 = vmul.f32 0.5, %v50_v19 }
  0xc4   :  { %v53_v21 = vsel %vm52_vm3, %v51_v20, 0.0 }
  0xc5   :  { %54 = vadd.xlane.f32.xlu0 %v53_v21 }
 0x152   :  { %v55_v22 = vpop.xlane.xlu0 %54 }
 0x153   :  { %v56_v23 = vrot.slane %v55_v22, 4 }
 0x155   :  { %v57_v24 = vadd.f32 %v56_v23, %v55_v22 }
 0x157   :  { %v58_v25 = vrot.slane %v57_v24, 2 }
 0x159   :  { %v59_v26 = vadd.f32 %v58_v25, %v57_v24 }
 0x15b   :  { %v60_v27 = vrot.slane %v59_v26, 1 }
 0x15d   :  { %v61_v28 = vadd.f32 %v60_v27, %v59_v26 }
 0x15f   :  { %80 = vpush %v61_v28 }
 0x190   :  { %s81_s27 = spop %80 }
 0x191   :  { %v63_v29 = vstv %s81_s27 }
 0x192   :  { %64 = vst [vmem:[#allocation5] sm:$0x1] %v63_v29 }
 0x193   :  { %119 = shalt.err (!%p116_p12)
}
 0x194   :  { %s120_s5 = scalar_lea.hbm %s189_s3, 16 }
 0x195   :  { %p121_p13 = scmp.ne.s32.totalorder %s189_s3, %s120_s5  ;;  %p124_p0 = scmp.lt.u32.totalorder %s120_s5, %s189_s3 }
 0x197   :  { %p126_p1 = pnand %p124_p0, %p121_p13 }
 0x199   :  { %129 = shalt.err (!%p126_p1)
}
 0x19a   :  { %74 = dma.vmem_to_hbm [thread:$0]  %s72_s2, 16, %s189_s3, [#allocation4]  }
 0x19b   :  { %132 = dma.done.wait [#allocation4], 16  }
 0x19c   :  { %133 = vsyncadd [#allocation4], 4294967280 }
 0x19d   :  { %78 = vsyncpa [#allocation3], 1 }
 0x19e   :  { %79 = vsyncpa [#allocation4], 1 }

</bundles_post_ra>
